<compile_context>
chip_gen: v6e
topology: v6e:2x2x1
jax: 0.10.0
libtpu: 0.0.40
codegen_flags: <defaults>
</compile_context>

<pallas_src>
import jax
import jax.numpy as jnp
from jax.experimental import pallas as pl
from jax.experimental.pallas import tpu as pltpu


_LANE = 128
# Per-grid-step VMEM working set budget (double-buffered blocks + in-kernel
# temps).  28 MiB fits every generation once the scoped limit is 32 MiB.
_VMEM_BUDGET_BYTES = 28 * 1024 * 1024
_VMEM_LIMIT_BYTES = 32 * 1024 * 1024
# Beyond 4096 lanes per tile the DMA-efficiency gains are ~1% (guide data:
# tile 512 -> 85%, 1024 -> 86% of roofline), so cap there.
_MAX_HW_TILE = 4096


def _round_up(x, m):
    return ((x + m - 1) // m) * m


def _step_vmem_bytes(t_hw, cin, cout, x_isz, out_isz, c_isz):
    b = 2 * cin * t_hw * x_isz            # double-buffered activation blocks
    b += 2 * cout * t_hw * out_isz        # double-buffered output blocks
    if c_isz != x_isz:                    # in-kernel cast temp (x -> compute dtype)
        b += cin * t_hw * c_isz
    b += 2 * cout * cin * c_isz           # resident weight (2 pipeline buffers)
    return b


def _pick_hw_tiling(hw, n_batch, cin, cout, x_isz, out_isz, c_isz):
    """Choose (t_hw, n_hw_tiles) for the HW (lane) axis."""
    if hw <= _LANE:
        # Sub-128 lane width must be a single full-extent block (masked partial
        # stores; acceptable -- these maps are tiny in absolute terms).
        # TODO(synk): a Cout-split grid axis could feed both v7x TensorCores
        # here, but the workload (<20 MFLOP) does not justify the complexity.
        return hw, 1

    # Largest 128-multiple tile within the cap that fits the VMEM budget.
    t_max = min(_MAX_HW_TILE, _round_up(hw, _LANE))
    while t_max > _LANE and _step_vmem_bytes(
            t_max, cin, cout, x_isz, out_isz, c_isz) > _VMEM_BUDGET_BYTES:
        t_max -= _LANE

    n_tiles = pl.cdiv(hw, t_max)
    # v7x megacore: guarantee >= 2 independent grid tiles so both TensorCores
    # get work (harmless on single-TC v5e/v6e).
    if n_batch * n_tiles < 2:
        n_tiles = 2
    if n_tiles == 1:
        return hw, 1  # full-extent block: legal for any HW, no masked tail.

    # Re-balance: keep the tile count, minimize the masked tail
    # (e.g. HW=1040 -> two 640-tiles instead of 1024 + a 16-wide ghost tile).
    t = min(_round_up(pl.cdiv(hw, n_tiles), _LANE), t_max)
    return t, pl.cdiv(hw, t)


def _conv1x1_kernel(w_ref, x_ref, o_ref):
    # w_ref: (Cout, Cin) weight block in the compute dtype, resident for the
    #        whole grid (constant index_map -> fetched once).
    # x_ref: (Cin, t_hw) activation tile in the activation dtype.
    # o_ref: (Cout, t_hw) output tile, f32-accumulated then cast to out dtype.
    x = x_ref[...]
    if x.dtype != w_ref.dtype:
        # Cast for the MXU.  Disappears (no VMEM temp) when the backbone
        # already emits activations in the compute dtype (e.g. bf16).
        x = x.astype(w_ref.dtype)
    o_ref[...] = jnp.dot(
        w_ref[...], x, preferred_element_type=jnp.float32
    ).astype(o_ref.dtype)


def conv1x1_nchw_pallas(x_nchw, w_oi11, *, compute_dtype=jnp.bfloat16,
                        out_dtype=None):
    """1x1 conv (no bias) on an NCHW feature map via a Pallas channel matmul.

    x_nchw:        (N, Cin, H, W) feature map (any float dtype; bf16 halves
                   the dominant HBM read).
    w_oi11:        (Cout, Cin, 1, 1) PyTorch Conv2d weight layout.
    compute_dtype: MXU operand dtype.  bf16 (default) is single-pass MXU;
                   jnp.float32 is the numerical-parity path.
    out_dtype:     output dtype.  None -> x_nchw.dtype (module parity);
                   jnp.bfloat16 halves writeback traffic if downstream allows.
    returns:       (N, Cout, H, W) in out_dtype.
    """
    N, Cin, H, W = x_nchw.shape
    Cout = w_oi11.shape[0]
    HW = H * W
    out_dtype = x_nchw.dtype if out_dtype is None else jnp.dtype(out_dtype)

    # Free, contiguous reshapes (no transposes, no extra HBM traffic).
    x2d = x_nchw.reshape(N * Cin, HW)
    # One-time weight prep: (Cout, Cin, 1, 1) -> (Cout, Cin) in compute dtype.
    w2d = w_oi11[:, :, 0, 0].astype(compute_dtype)

    x_isz = jnp.dtype(x_nchw.dtype).itemsize
    o_isz = jnp.dtype(out_dtype).itemsize
    c_isz = jnp.dtype(compute_dtype).itemsize
    t_hw, n_hw_tiles = _pick_hw_tiling(HW, N, Cin, Cout, x_isz, o_isz, c_isz)

    grid = (N, n_hw_tiles)

    cost = pl.CostEstimate(
        flops=2 * N * Cout * Cin * HW,
        transcendentals=0,
        bytes_accessed=(N * Cin * HW * x_isz
                        + N * Cout * HW * o_isz
                        + Cout * Cin * c_isz),
    )

    out2d = pl.pallas_call(
        _conv1x1_kernel,
        out_shape=jax.ShapeDtypeStruct((N * Cout, HW), out_dtype),
        grid_spec=pltpu.PrefetchScalarGridSpec(
            num_scalar_prefetch=0,
            grid=grid,
            in_specs=[
                # Whole weight, same block for every grid step -> fetched once.
                pl.BlockSpec((Cout, Cin), lambda n, j: (0, 0)),
                # Batch n's channel slab, HW tile j (lane-dense loads).
                pl.BlockSpec((Cin, t_hw), lambda n, j: (n, j)),
            ],
            out_specs=pl.BlockSpec((Cout, t_hw), lambda n, j: (n, j)),
        ),
        compiler_params=pltpu.CompilerParams(
            dimension_semantics=("parallel", "parallel"),
            vmem_limit_bytes=_VMEM_LIMIT_BYTES,
        ),
        cost_estimate=cost,
    )(w2d, x2d)

    return out2d.reshape(N, Cout, H, W)


def base_pretrain_nn_custom_model(x_nchw, conv_weight_oi11, **kwargs):
    """Pallas implementation of BasePreTrainNN.custom_model.

    x_nchw:           (N, 512, H, W)    -- backbone feature map
    conv_weight_oi11: (256, 512, 1, 1)  -- Conv2d weight (PyTorch layout)
    returns:          (N, 256, H, W)
    """
    y = conv1x1_nchw_pallas(x_nchw, conv_weight_oi11, **kwargs)
    # nn.MaxPool2d(kernel_size=(1,1), stride=(1,1)) is the identity.
    return y


if __name__ == "__main__":
    key = jax.random.PRNGKey(0)
    k_x1, k_x2, k_w = jax.random.split(key, 3)

    # Module-consistent channel counts: backbone emits 512 channels, conv -> 256.
    Nb, Cin, Cout = 2, 512, 256

    # Deterministic Conv2d weight (PyTorch layout (Cout, Cin, 1, 1)),
    # kaiming-uniform-like scale for a 1x1 conv with fan_in = Cin.
    bound = 1.0 / float(Cin) ** 0.5
    conv_w = jax.random.uniform(
        k_w, (Cout, Cin, 1, 1), dtype=jnp.float32, minval=-bound, maxval=bound
    )
    w2d_ref = conv_w[:, :, 0, 0]

    # Case 1: lane-dense spatial map (HW = 256), default bf16-compute path.
    H1 = W1 = 16
    x1 = jax.random.normal(k_x1, (Nb, Cin, H1, W1), dtype=jnp.float32)
    y1 = jax.block_until_ready(base_pretrain_nn_custom_model(x1, conv_w))
    ref1 = jnp.einsum("nchw,oc->nohw", x1, w2d_ref)
    assert y1.shape == (Nb, Cout, H1, W1)
    assert y1.dtype == x1.dtype
    # bf16 MXU operands with f32 accumulation -> looser tolerance than pure f32.
    assert jnp.allclose(y1, ref1, atol=3e-2, rtol=3e-2)

    # Case 1b: f32 parity path (compute_dtype=f32, no explicit downcast).
    y1f = jax.block_until_ready(
        conv1x1_nchw_pallas(x1, conv_w, compute_dtype=jnp.float32))
    assert jnp.allclose(y1f, ref1, atol=2e-2, rtol=2e-2)

    # Case 2: ResNet-style 7x7 map (HW = 49, not a multiple of 128) --
    # exercises the full-extent-block path with no host-side padding.
    H2 = W2 = 7
    x2 = jax.random.normal(k_x2, (Nb, Cin, H2, W2), dtype=jnp.float32)
    y2 = jax.block_until_ready(base_pretrain_nn_custom_model(x2, conv_w))
    ref2 = jnp.einsum("nchw,oc->nohw", x2, w2d_ref)
    assert y2.shape == (Nb, Cout, H2, W2)
    assert jnp.allclose(y2, ref2, atol=3e-2, rtol=3e-2)

    # Case 3: bandwidth-optimal configuration -- bf16 activations in, bf16 out
    # (halves HBM traffic vs f32 in / f32 out; the backbone should emit bf16).
    x3 = x1.astype(jnp.bfloat16)
    y3 = jax.block_until_ready(
        base_pretrain_nn_custom_model(x3, conv_w, out_dtype=jnp.bfloat16))
    assert y3.dtype == jnp.bfloat16
    assert jnp.allclose(y3.astype(jnp.float32), ref1, atol=6e-2, rtol=6e-2)

    print("KERNEL_OK")
</pallas_src>

<mosaic_0001>
module attributes {stable_mosaic.version = 11 : i64} {
  func.func @_conv1x1_kernel(%arg0: i32, %arg1: i32, %arg2: memref<256x512xbf16, #tpu.memory_space<vmem>>, %arg3: memref<512x256xf32, #tpu.memory_space<vmem>>, %arg4: memref<256x256xf32, #tpu.memory_space<vmem>>) attributes {dimension_semantics = [#tpu.dimension_semantics<parallel>, #tpu.dimension_semantics<parallel>], iteration_bounds = array<i64: 2, 1>, scalar_prefetch = 0 : i64, scratch_operands = 0 : i64, tpu.core_type = #tpu.core_type<tc>, window_params = [{pipeline_mode = #tpu.pipeline_mode<synchronous>, transform_indices = @transform_0, window_bounds = array<i64: 256, 512>}, {transform_indices = @transform_1, window_bounds = array<i64: 512, 256>}, {transform_indices = @transform_2, window_bounds = array<i64: 256, 256>}]} {
    %c0 = arith.constant 0 : index
    %c0_0 = arith.constant 0 : index
    %0 = vector.load %arg3[%c0, %c0_0] : memref<512x256xf32, #tpu.memory_space<vmem>>, vector<512x256xf32>
    %1 = arith.truncf %0 : vector<512x256xf32> to vector<512x256xbf16>
    %c0_1 = arith.constant 0 : index
    %c0_2 = arith.constant 0 : index
    %2 = vector.load %arg2[%c0_1, %c0_2] : memref<256x512xbf16, #tpu.memory_space<vmem>>, vector<256x512xbf16>
    %cst = arith.constant dense<0.000000e+00> : vector<256x256xf32>
    %3 = tpu.matmul %2, %1, %cst {dimension_numbers = #tpu.dot_dimension_numbers<[1], [0], [0], [1], [0, 0, 1, 1], [], []>} : vector<256x512xbf16>, vector<512x256xbf16>, vector<256x256xf32> -> vector<256x256xf32>
    %c0_3 = arith.constant 0 : index
    %c0_4 = arith.constant 0 : index
    %4 = vector.load %arg4[%c0_3, %c0_4] : memref<256x256xf32, #tpu.memory_space<vmem>>, vector<256x256xf32>
    tpu.vector_store %arg4[%c0_3, %c0_4], %3 {strides = array<i32>} : memref<256x256xf32, #tpu.memory_space<vmem>>, vector<256x256xf32>,
    return
  }
  func.func @transform_0(%arg0: i32, %arg1: i32) -> (i32, i32) {
    %c0_i32 = arith.constant 0 : i32
    %c0_i32_0 = arith.constant 0 : i32
    %c0_i32_1 = arith.constant 0 : i32
    return %c0_i32, %c0_i32_0 : i32, i32
  }
  func.func @transform_1(%arg0: i32, %arg1: i32) -> (i32, i32) {
    %c0_i32 = arith.constant 0 : i32
    return %arg0, %arg1 : i32, i32
  }
  func.func @transform_2(%arg0: i32, %arg1: i32) -> (i32, i32) {
    %c0_i32 = arith.constant 0 : i32
    return %arg0, %arg1 : i32, i32
  }
}

</mosaic_0001>

<bundles_post_ra>
// kernel: tpu_custom_call.1
= control target key start
LH: loop header
LB: loop body
LE: loop exit
PB: predicated region body
PF: predicated region fallthrough
CT: control target
= control target key end

     0   :  { %7 = vsyncpa [#allocation3], 0  ;;  %s2149_s0 = inlined_call_operand.hbm [shape: bf16[256,512], index: 0, kind: input, shape index: {}]   ;;  %s2150_s1 = inlined_call_operand.hbm [shape: f32[1024,256], index: 1, kind: input, shape index: {}]   ;;  %s2151_s2 = inlined_call_operand.hbm [shape: f32[512,256], index: 2, kind: output, shape index: {}]  }
   0x1   :  { %8 = vsyncpa [#allocation6], 0 }
   0x2   :  { %10 = vsyncpa [#allocation6 + $0x1], 0 }
   0x3   :  { %11 = vsyncpa [#allocation4], 0 }
   0x4   :  { %13 = vsyncpa [#allocation4 + $0x1], 0  ;;  %s1764_s9 = smov 0   ;;  %s1766_s10 = smov 0  }
   0x5   :  { %s1768_s11 = smov 0   ;;  %s1770_s12 = smov 0  }
   0x6   :  { %s1772_s13 = smov 0   ;;  %s1774_s14 = smov 0  }
   0x7 LB: > { %s1342_s15 = sadd.s32 4294967295, %s1740_s14   ;;  %s1343_s16 = sadd.s32 4294967294, %s1740_s14   ;;  %s1740_s14 = sphi %s1774_s14, %s19_s14   ;;  %s1736_s13 = sphi %s1772_s13, %s2171_s13   ;;  %s1732_s12 = sphi %s1770_s12, %s2170_s12   ;;  %s1728_s11 = sphi %s1768_s11, %s2169_s11   ;;  %s1724_s10 = sphi %s1766_s10, %s2168_s10   ;;  %s1720_s9 = sphi %s1764_s9, %s2167_s9  }
   0x8   : > { %p74_p0 = scmp.ne.s32.totalorder %s1724_s10, %s1720_s9  ;;  %p1798_p1 = scmp.eq.s32.totalorder %s1342_s15, 0 }
   0x9   : > { %p1802_p2 = scmp.eq.s32.totalorder %s1342_s15, 1  ;;  %p106_p3 = scmp.eq.s32.totalorder %s1343_s16, 1 }
   0xa   : > { %p1808_p4 = por %p1798_p1, %p74_p0  ;;  %p1344_p5 = scmp.ge.s32.totalorder %s1740_s14, 1 }
   0xb   : > { %p1813_p6 = por %p106_p3, %p74_p0  ;;  %p113_p7 = scmp.lt.s32.totalorder %s1740_s14, 3 }
   0xc   : > { %s2156_s19 = scalar_select %p1808_p4, 1, 0 }
   0xd   : > { %s2157_s20 = scalar_select %p1813_p6, 1, 0 }
   0xe   : > { %p1818_p8 = pnand %p1344_p5, %p113_p7  ;;  %s1742_s22 = smov [#allocation2]  }
   0xf   : > { %s125_s23 = sshll.u32 %s1742_s22, 4  ;;  %s31_s25 = sadd.s32 1, %s1736_s13  ;;  %s126_s23 = int_to_ptr.vmem [resolvable:$true] %s125_s23 }
  0x10   : > { %p1437_p9 = pneg %p1818_p8  ;;  %s1613_s26 = scalar_lea.vmem %s126_s23, 8192 }
  0x11   : > { %p1614_p13 = scmp.ne.s32.totalorder %s126_s23, %s1613_s26  ;;  %p1621_p5 = scmp.lt.s32.totalorder %s126_s23, %s126_s23 }
  0x12   : > { %p1827_p11 = pnand %p1437_p9, %p1798_p1  ;;  %p1622_p7 = scmp.lt.s32.totalorder %s1613_s26, %s1613_s26 }
  0x14   : > { %p1604_p12 = pneg %p1827_p11  ;;  %p1623_p6 = por %p1622_p7, %p1621_p5 }
  0x16   : > { %p1616_p0 = pnand %p1614_p13, %p1604_p12 }
  0x18   : > { %p1617_p3 = pneg %p1616_p0 }
  0x1a   : > { %p1624_p4 = pnand %p1623_p6, %p1617_p3 }
  0x1c   : > { %1627 = shalt.err (!%p1624_p4)
}
  0x1d   : > { %s2153_s27 = smov 256   ;;  %s1744_s28 = smov 16  }
  0x1e   : > { %1440 = dma.hbm_to_vmem [thread:$0]  (!%p1827_p11), %s2149_s0, 8192, %s126_s23, [#allocation3], %s2153_s27, %s2153_s27, %s1744_s28  }
  0x1f   : > { %p33_p4 = scmp.ge.s32.totalorder %s31_s25, 2  ;;  %s61_s3 = sadd.s32 1, %s1728_s11 }
  0x20   : > { %p68_p6 = scmp.ne.s32.totalorder %s1728_s11, %s1724_s10  ;;  %p69_p9 = scmp.eq.s32.totalorder %s1740_s14, 0 }
  0x21   : > { %s2173_s25 = smov (%p33_p4, %s31_s25), 0  ;;  %p1450_p0 = scmp.lt.s32.totalorder %s1740_s14, 2 }
  0x22   : > { %p1848_p12 = por %p69_p9, %p68_p6  ;;  %p1854_p13 = por %p1802_p2, %p68_p6 }
  0x23   : > { %s56_s6 = ssub.s32 %s1736_s13, %s2173_s25  ;;  %s139_s7 = sand.u32 1, %s1728_s11  }
  0x24   : > { %p59_p11 = scmp.eq.s32.totalorder %s56_s6, 0  ;;  %s1347_s8 = sshll.u32 %s139_s7, 10 }
  0x25   : > { %s1426_s16 = sshll.u32 %s1736_s13, 14  ;;  %s143_s26 = scalar_lea.vmem [#allocation5], %s1347_s8 }
  0x26   : > { %s1863_s15 = scalar_select %p59_p11, %s1728_s11, %s61_s3  }
  0x27   : > { %s152_s24 = scalar_lea.hbm %s2150_s1, %s1426_s16  ;;  %s153_s29 = sshll.u32 %s143_s26, 4  ;;  %s154_s29 = int_to_ptr.vmem [resolvable:$true] %s153_s29 }
  0x28   : > { %p1871_p2 = pnand %p1450_p0, %p1848_p12  ;;  %s140_s30 = scalar_lea.sflag [#allocation6], %s139_s7 }
  0x29   : > { %s1641_s6 = scalar_lea.vmem %s154_s29, 16384  ;;  %s1745_s3 = smov [#allocation5]  }
  0x2a   : > { %p1630_p3 = pneg %p1871_p2  ;;  %p1642_p5 = scmp.ne.s32.totalorder %s154_s29, %s1641_s6 }
  0x2b   : > { %s1646_s27 = sshll.u32 %s1745_s3, 4  ;;  %s1647_s27 = int_to_ptr.vmem [resolvable:$false] %s1646_s27 }
  0x2c   : > { %p1644_p7 = pnand %p1642_p5, %p1630_p3  ;;  %s1648_s16 = scalar_lea.vmem %s1647_s27, 32768 }
  0x2d   : > { %p1649_p6 = scmp.lt.s32.totalorder %s154_s29, %s1647_s27  ;;  %p1650_p9 = scmp.lt.s32.totalorder %s1648_s16, %s1641_s6 }
  0x2e   : > { %p1645_p4 = pneg %p1644_p7 }
  0x2f   : > { %p1651_p11 = por %p1650_p9, %p1649_p6 }
  0x31   : > { %p1652_p10 = pnand %p1651_p11, %p1645_p4 }
  0x33   : > { %1655 = shalt.err (!%p1652_p10)
}
  0x34   : > { %s2163_s4 = smov 256   ;;  %165 = sbr.rel (%p1818_p8) target bundleno = 466 (0x1d2), region = 28 }
  0x35   : > { %1444 = dma.hbm_to_vmem [thread:$0]  (!%p1871_p2), %s152_s24, 16384, %s154_s29, %s140_s30, %s2163_s4, %s2163_s4, %s1744_s28  }
  0x39   : > { %1707 = dma.done.wait (%p1798_p1), [#allocation3], 8192  }
  0x3a   : > { %1709 = vsyncadd (%p1798_p1), [#allocation3], 4294959104  ;;  %s1889_s27 = sand.u32 1, %s1724_s10   ;;  %p2164_p10 = scmp.ne.s32.totalorder %s2156_s19, 0 }
  0x3b   : > { %s1353_s7 = sshll.u32 %s1889_s27, 10  ;;  %s172_s8 = scalar_lea.sflag [#allocation6], %s1889_s27 }
  0x3c   : > { %s1893_s22 = scalar_lea.vmem [#allocation5], %s1353_s7 }
  0x3d   : > { %1711 = dma.done.wait (%p2164_p10), %s172_s8, 16384  }
  0x3e   : > { %1713 = vsyncadd (%p2164_p10), %s172_s8, 4294950912  ;;  %v229_v0 = vld [vmem:[%s1893_s22 + $0xe8] sm:$0xff]  ;;  %v231_v1 = vld [vmem:[%s1893_s22 + $0xf8] sm:$0xff]  ;;  %s1354_s17 = sshll.u32 %s1889_s27, 9  ;;  %s1428_s21 = sshll.u32 %s1732_s12, 13 }
  0x3f   : > { %v293_v2 = vld [vmem:[%s1893_s22 + $0x2e8] sm:$0xff]  ;;  %v343_v3 = vpack.c.bf16 %v231_v1, %v229_v0  ;;  %v295_v4 = vld [vmem:[%s1893_s22 + $0x2f8] sm:$0xff]  ;;  %v228_v5 = vld [vmem:[%s1893_s22 + $0xe0] sm:$0xff]  ;;  %s2028_s19 = scalar_lea.vmem [#allocation7], %s1354_s17  ;;  %s2097_s26 = scalar_lea.hbm %s2151_s2, %s1428_s21 }
  0x40   : > { %v230_v6 = vld [vmem:[%s1893_s22 + $0xf0] sm:$0xff]  ;;  %v375_v7 = vpack.c.bf16 %v295_v4, %v293_v2  ;;  %v292_v9 = vld [vmem:[%s1893_s22 + $0x2e0] sm:$0xff]  ;;  %v225_v11 = vld [vmem:[%s1893_s22 + $0xc8] sm:$0xff]  ;;  %s1243_s28 = sshll.u32 %s2028_s19, 4  ;;  %s1227_s12 = scalar_lea.sflag [#allocation4], %s1889_s27  ;;  %s2099_s28 = int_to_ptr.vmem [resolvable:$true] %s1243_s28 }
  0x41   : > { %v342_v8 = vpack.c.bf16 %v230_v6, %v228_v5  ;;  %v294_v10 = vld [vmem:[%s1893_s22 + $0x2f0] sm:$0xff]  ;;  %776 = vmatprep.subr.bf16.mxu0 %v343_v3  ;;  %v227_v13 = vld [vmem:[%s1893_s22 + $0xd8] sm:$0xff]  ;;  %v289_v14 = vld [vmem:[%s1893_s22 + $0x2c8] sm:$0xff]  ;;  %s1656_s29 = scalar_lea.vmem %s2099_s28, 8192  ;;  %s1746_s18 = smov [#allocation7]  }
  0x42   : > { %v374_v12 = vpack.c.bf16 %v294_v10, %v292_v9  ;;  %v291_v15 = vld [vmem:[%s1893_s22 + $0x2d8] sm:$0xff]  ;;  %969 = vmatprep.subr.bf16.mxu1 %v375_v7  ;;  %v341_v16 = vpack.c.bf16 %v227_v13, %v225_v11  ;;  %v224_v18 = vld [vmem:[%s1893_s22 + $0xc0] sm:$0xff]  ;;  %v226_v19 = vld [vmem:[%s1893_s22 + $0xd0] sm:$0xff]  ;;  %p1657_p1 = scmp.ne.s32.totalorder %s2099_s28, %s1656_s29  ;;  %s1660_s30 = sshll.u32 %s1746_s18, 4  ;;  %s1661_s30 = int_to_ptr.vmem [resolvable:$false] %s1660_s30 }
  0x43   : > { %777 = vmatpush1.bf16.msra.mxu0 %v342_v8  ;;  %v373_v17 = vpack.c.bf16 %v291_v15, %v289_v14  ;;  %v288_v20 = vld [vmem:[%s1893_s22 + $0x2c0] sm:$0xff]  ;;  %v340_v21 = vpack.c.bf16 %v226_v19, %v224_v18  ;;  %v290_v22 = vld [vmem:[%s1893_s22 + $0x2d0] sm:$0xff]  ;;  %v221_v23 = vld [vmem:[%s1893_s22 + $0xa8] sm:$0xff]  ;;  %s1662_s6 = scalar_lea.vmem %s1661_s30, 16384  ;;  %p1663_p0 = scmp.lt.s32.totalorder %s2099_s28, %s1661_s30 }
  0x44   : > { %970 = vmatpush1.bf16.msra.mxu1 %v374_v12  ;;  %v223_v24 = vld [vmem:[%s1893_s22 + $0xb8] sm:$0xff]  ;;  %778 = vmatprep.subr.bf16.mxu0 %v341_v16  ;;  %v372_v25 = vpack.c.bf16 %v290_v22, %v288_v20  ;;  %v285_v27 = vld [vmem:[%s1893_s22 + $0x2a8] sm:$0xff]  ;;  %v220_v29 = vld [vmem:[%s1893_s22 + $0xa0] sm:$0xff]  ;;  %p1658_p8 = pnand %p1657_p1, %p1854_p13  ;;  %p1664_p2 = scmp.lt.s32.totalorder %s1662_s6, %s1656_s29 }
  0x45   : > { %971 = vmatprep.subr.bf16.mxu1 %v373_v17  ;;  %v339_v26 = vpack.c.bf16 %v223_v24, %v221_v23  ;;  %v287_v28 = vld [vmem:[%s1893_s22 + $0x2b8] sm:$0xff]  ;;  %v222_v31 = vld [vmem:[%s1893_s22 + $0xb0] sm:$0xff]  ;;  %v284_v32 = vld [vmem:[%s1893_s22 + $0x2a0] sm:$0xff] }
  0x46   : > { %v371_v30 = vpack.c.bf16 %v287_v28, %v285_v27  ;;  %v286_v33 = vld [vmem:[%s1893_s22 + $0x2b0] sm:$0xff]  ;;  %v338_v34 = vpack.c.bf16 %v222_v31, %v220_v29  ;;  %v217_v35 = vld [vmem:[%s1893_s22 + $0x88] sm:$0xff]  ;;  %v219_v36 = vld [vmem:[%s1893_s22 + $0x98] sm:$0xff]  ;;  %p1659_p12 = pneg %p1658_p8  ;;  %p1665_p3 = por %p1664_p2, %p1663_p0 }
  0x47   : > { %779 = vmatpush1.bf16.msra.mxu0 %v340_v21  ;;  %v281_v37 = vld [vmem:[%s1893_s22 + $0x288] sm:$0xff]  ;;  %v370_v38 = vpack.c.bf16 %v286_v33, %v284_v32  ;;  %v337_v39 = vpack.c.bf16 %v219_v36, %v217_v35  ;;  %v283_v40 = vld [vmem:[%s1893_s22 + $0x298] sm:$0xff]  ;;  %v216_v41 = vld [vmem:[%s1893_s22 + $0x80] sm:$0xff] }
  0x48   : > { %972 = vmatpush1.bf16.msra.mxu1 %v372_v25  ;;  %780 = vmatprep.subr.bf16.mxu0 %v339_v26  ;;  %v218_v42 = vld [vmem:[%s1893_s22 + $0x90] sm:$0xff]  ;;  %v369_v43 = vpack.c.bf16 %v283_v40, %v281_v37  ;;  %v280_v44 = vld [vmem:[%s1893_s22 + $0x280] sm:$0xff]  ;;  %v213_v46 = vld [vmem:[%s1893_s22 + $0x68] sm:$0xff]  ;;  %p1666_p5 = pnand %p1665_p3, %p1659_p12 }
  0x49   : > { %973 = vmatprep.subr.bf16.mxu1 %v371_v30  ;;  %v282_v45 = vld [vmem:[%s1893_s22 + $0x290] sm:$0xff]  ;;  %v215_v47 = vld [vmem:[%s1893_s22 + $0x78] sm:$0xff]  ;;  %v277_v48 = vld [vmem:[%s1893_s22 + $0x268] sm:$0xff]  ;;  %v336_v50 = vpack.c.bf16 %v218_v42, %v216_v41 }
  0x4a   : > { %v279_v49 = vld [vmem:[%s1893_s22 + $0x278] sm:$0xff]  ;;  %v368_v51 = vpack.c.bf16 %v282_v45, %v280_v44  ;;  %v335_v52 = vpack.c.bf16 %v215_v47, %v213_v46  ;;  %v212_v53 = vld [vmem:[%s1893_s22 + $0x60] sm:$0xff]  ;;  %v214_v54 = vld [vmem:[%s1893_s22 + $0x70] sm:$0xff] }
  0x4b   : > { %781 = vmatpush1.bf16.msra.mxu0 %v338_v34  ;;  %v276_v55 = vld [vmem:[%s1893_s22 + $0x260] sm:$0xff]  ;;  %v367_v56 = vpack.c.bf16 %v279_v49, %v277_v48  ;;  %v278_v57 = vld [vmem:[%s1893_s22 + $0x270] sm:$0xff]  ;;  %v209_v58 = vld [vmem:[%s1893_s22 + $0x48] sm:$0xff]  ;;  %v334_v62 = vpack.c.bf16 %v214_v54, %v212_v53 }
  0x4c   : > { %974 = vmatpush1.bf16.msra.mxu1 %v370_v38  ;;  %782 = vmatprep.subr.bf16.mxu0 %v337_v39  ;;  %v211_v59 = vld [vmem:[%s1893_s22 + $0x58] sm:$0xff]  ;;  %v273_v60 = vld [vmem:[%s1893_s22 + $0x248] sm:$0xff]  ;;  %v366_v63 = vpack.c.bf16 %v278_v57, %v276_v55  ;;  %v208_v1 = vld [vmem:[%s1893_s22 + $0x40] sm:$0xff] }
  0x4d   : > { %975 = vmatprep.subr.bf16.mxu1 %v369_v43  ;;  %v275_v61 = vld [vmem:[%s1893_s22 + $0x258] sm:$0xff]  ;;  %v333_v0 = vpack.c.bf16 %v211_v59, %v209_v58  ;;  %v210_v2 = vld [vmem:[%s1893_s22 + $0x50] sm:$0xff]  ;;  %v272_v3 = vld [vmem:[%s1893_s22 + $0x240] sm:$0xff] }
  0x4e   : > { %v365_v4 = vpack.c.bf16 %v275_v61, %v273_v60  ;;  %v274_v5 = vld [vmem:[%s1893_s22 + $0x250] sm:$0xff]  ;;  %v205_v6 = vld [vmem:[%s1893_s22 + $0x28] sm:$0xff]  ;;  %v207_v7 = vld [vmem:[%s1893_s22 + $0x38] sm:$0xff]  ;;  %v332_v10 = vpack.c.bf16 %v210_v2, %v208_v1 }
  0x4f   : > { %783 = vmatpush1.bf16.msra.mxu0 %v336_v50  ;;  %v269_v8 = vld [vmem:[%s1893_s22 + $0x228] sm:$0xff]  ;;  %v271_v9 = vld [vmem:[%s1893_s22 + $0x238] sm:$0xff]  ;;  %v364_v11 = vpack.c.bf16 %v274_v5, %v272_v3  ;;  %v331_v12 = vpack.c.bf16 %v207_v7, %v205_v6  ;;  %v204_v13 = vld [vmem:[%s1893_s22 + $0x20] sm:$0xff] }
  0x50   : > { %976 = vmatpush1.bf16.msra.mxu1 %v368_v51  ;;  %784 = vmatprep.subr.bf16.mxu0 %v335_v52  ;;  %v206_v14 = vld [vmem:[%s1893_s22 + $0x30] sm:$0xff]  ;;  %v268_v15 = vld [vmem:[%s1893_s22 + $0x220] sm:$0xff]  ;;  %v363_v16 = vpack.c.bf16 %v271_v9, %v269_v8  ;;  %v201_v18 = vld [vmem:[%s1893_s22 + $0x8] sm:$0xff] }
  0x51   : > { %977 = vmatprep.subr.bf16.mxu1 %v367_v56  ;;  %v270_v17 = vld [vmem:[%s1893_s22 + $0x230] sm:$0xff]  ;;  %v203_v19 = vld [vmem:[%s1893_s22 + $0x18] sm:$0xff]  ;;  %v265_v20 = vld [vmem:[%s1893_s22 + $0x208] sm:$0xff]  ;;  %v330_v22 = vpack.c.bf16 %v206_v14, %v204_v13 }
  0x52   : > { %v267_v21 = vld [vmem:[%s1893_s22 + $0x218] sm:$0xff]  ;;  %v362_v23 = vpack.c.bf16 %v270_v17, %v268_v15  ;;  %v329_v24 = vpack.c.bf16 %v203_v19, %v201_v18  ;;  %v200_v25 = vld [vmem:[%s1893_s22] sm:$0xff]  ;;  %v202_v26 = vld [vmem:[%s1893_s22 + $0x10] sm:$0xff] }
  0x53   : > { %785 = vmatpush1.bf16.msra.mxu0 %v334_v62  ;;  %v264_v27 = vld [vmem:[%s1893_s22 + $0x200] sm:$0xff]  ;;  %v361_v28 = vpack.c.bf16 %v267_v21, %v265_v20  ;;  %v266_v29 = vld [vmem:[%s1893_s22 + $0x210] sm:$0xff]  ;;  %v261_v30 = vld [vmem:[%s1893_s22 + $0x1e8] sm:$0xff]  ;;  %v328_v34 = vpack.c.bf16 %v202_v26, %v200_v25 }
  0x54   : > { %978 = vmatpush1.bf16.msra.mxu1 %v366_v63  ;;  %786 = vmatprep.subr.bf16.mxu0 %v333_v0  ;;  %v263_v31 = vld [vmem:[%s1893_s22 + $0x1f8] sm:$0xff]  ;;  %v325_v32 = vld [vmem:[%s1893_s22 + $0x3e8] sm:$0xff]  ;;  %v360_v35 = vpack.c.bf16 %v266_v29, %v264_v27  ;;  %v260_v37 = vld [vmem:[%s1893_s22 + $0x1e0] sm:$0xff] }
  0x55   : > { %979 = vmatprep.subr.bf16.mxu1 %v365_v4  ;;  %v327_v33 = vld [vmem:[%s1893_s22 + $0x3f8] sm:$0xff]  ;;  %v359_v36 = vpack.c.bf16 %v263_v31, %v261_v30  ;;  %v262_v38 = vld [vmem:[%s1893_s22 + $0x1f0] sm:$0xff]  ;;  %v324_v39 = vld [vmem:[%s1893_s22 + $0x3e0] sm:$0xff] }
  0x56   : > { %v391_v40 = vpack.c.bf16 %v327_v33, %v325_v32  ;;  %v326_v41 = vld [vmem:[%s1893_s22 + $0x3f0] sm:$0xff]  ;;  %v257_v42 = vld [vmem:[%s1893_s22 + $0x1c8] sm:$0xff]  ;;  %v259_v43 = vld [vmem:[%s1893_s22 + $0x1d8] sm:$0xff]  ;;  %v358_v46 = vpack.c.bf16 %v262_v38, %v260_v37 }
  0x57   : > { %787 = vmatpush1.bf16.msra.mxu0 %v332_v10  ;;  %v321_v44 = vld [vmem:[%s1893_s22 + $0x3c8] sm:$0xff]  ;;  %v323_v45 = vld [vmem:[%s1893_s22 + $0x3d8] sm:$0xff]  ;;  %v390_v47 = vpack.c.bf16 %v326_v41, %v324_v39  ;;  %v357_v48 = vpack.c.bf16 %v259_v43, %v257_v42  ;;  %v256_v49 = vld [vmem:[%s1893_s22 + $0x1c0] sm:$0xff] }
  0x58   : > { %980 = vmatpush1.bf16.msra.mxu1 %v364_v11  ;;  %788 = vmatprep.subr.bf16.mxu0 %v331_v12  ;;  %v258_v50 = vld [vmem:[%s1893_s22 + $0x1d0] sm:$0xff]  ;;  %v320_v51 = vld [vmem:[%s1893_s22 + $0x3c0] sm:$0xff]  ;;  %v389_v52 = vpack.c.bf16 %v323_v45, %v321_v44  ;;  %v253_v54 = vld [vmem:[%s1893_s22 + $0x1a8] sm:$0xff] }
  0x59   : > { %981 = vmatprep.subr.bf16.mxu1 %v363_v16  ;;  %v322_v53 = vld [vmem:[%s1893_s22 + $0x3d0] sm:$0xff]  ;;  %v255_v55 = vld [vmem:[%s1893_s22 + $0x1b8] sm:$0xff]  ;;  %v317_v56 = vld [vmem:[%s1893_s22 + $0x3a8] sm:$0xff]  ;;  %v356_v58 = vpack.c.bf16 %v258_v50, %v256_v49 }
  0x5a   : > { %v319_v57 = vld [vmem:[%s1893_s22 + $0x3b8] sm:$0xff]  ;;  %v388_v59 = vpack.c.bf16 %v322_v53, %v320_v51  ;;  %v355_v60 = vpack.c.bf16 %v255_v55, %v253_v54  ;;  %v252_v61 = vld [vmem:[%s1893_s22 + $0x1a0] sm:$0xff]  ;;  %v254_v62 = vld [vmem:[%s1893_s22 + $0x1b0] sm:$0xff] }
  0x5b   : > { %789 = vmatpush1.bf16.msra.mxu0 %v330_v22  ;;  %v316_v63 = vld [vmem:[%s1893_s22 + $0x3a0] sm:$0xff]  ;;  %v387_v0 = vpack.c.bf16 %v319_v57, %v317_v56  ;;  %v318_v1 = vld [vmem:[%s1893_s22 + $0x3b0] sm:$0xff]  ;;  %v249_v2 = vld [vmem:[%s1893_s22 + $0x188] sm:$0xff]  ;;  %v354_v6 = vpack.c.bf16 %v254_v62, %v252_v61 }
  0x5c   : > { %982 = vmatpush1.bf16.msra.mxu1 %v362_v23  ;;  %790 = vmatprep.subr.bf16.mxu0 %v329_v24  ;;  %v251_v3 = vld [vmem:[%s1893_s22 + $0x198] sm:$0xff]  ;;  %v313_v4 = vld [vmem:[%s1893_s22 + $0x388] sm:$0xff]  ;;  %v248_v7 = vld [vmem:[%s1893_s22 + $0x180] sm:$0xff]  ;;  %v386_v10 = vpack.c.bf16 %v318_v1, %v316_v63 }
  0x5d   : > { %983 = vmatprep.subr.bf16.mxu1 %v361_v28  ;;  %v315_v5 = vld [vmem:[%s1893_s22 + $0x398] sm:$0xff]  ;;  %v250_v8 = vld [vmem:[%s1893_s22 + $0x190] sm:$0xff]  ;;  %v312_v9 = vld [vmem:[%s1893_s22 + $0x380] sm:$0xff]  ;;  %v353_v11 = vpack.c.bf16 %v251_v3, %v249_v2 }
  0x5e   : > { %v314_v12 = vld [vmem:[%s1893_s22 + $0x390] sm:$0xff]  ;;  %v245_v13 = vld [vmem:[%s1893_s22 + $0x168] sm:$0xff]  ;;  %v247_v14 = vld [vmem:[%s1893_s22 + $0x178] sm:$0xff]  ;;  %v385_v15 = vpack.c.bf16 %v315_v5, %v313_v4  ;;  %v352_v21 = vpack.c.bf16 %v250_v8, %v248_v7 }
  0x5f   : > { %791 = vmatpush1.bf16.msra.mxu0 %v328_v34  ;;  %v309_v16 = vld [vmem:[%s1893_s22 + $0x368] sm:$0xff]  ;;  %v311_v17 = vld [vmem:[%s1893_s22 + $0x378] sm:$0xff]  ;;  %v244_v18 = vld [vmem:[%s1893_s22 + $0x160] sm:$0xff]  ;;  %v384_v26 = vpack.c.bf16 %v314_v12, %v312_v9  ;;  %v351_v27 = vpack.c.bf16 %v247_v14, %v245_v13 }
  0x60   : > { %984 = vmatpush1.bf16.msra.mxu1 %v360_v35  ;;  %792 = vmatprep.subr.bf16.mxu0 %v359_v36  ;;  %v246_v19 = vld [vmem:[%s1893_s22 + $0x170] sm:$0xff]  ;;  %v308_v22 = vld [vmem:[%s1893_s22 + $0x360] sm:$0xff]  ;;  %v241_v24 = vld [vmem:[%s1893_s22 + $0x148] sm:$0xff]  ;;  %v383_v29 = vpack.c.bf16 %v311_v17, %v309_v16 }
  0x61   : > { %985 = vmatprep.subr.bf16.mxu1 %v391_v40  ;;  %v1508_v20 = vld [vmem:[#allocation2 + $0x4] ss:$16 sps:$4 sm:$0xff]   ;;  %v243_v25 = vld [vmem:[%s1893_s22 + $0x158] sm:$0xff]  ;;  %v305_v30 = vld [vmem:[%s1893_s22 + $0x348] sm:$0xff]  ;;  %v350_v34 = vpack.c.bf16 %v246_v19, %v244_v18 }
  0x62   : > { %v310_v23 = vld [vmem:[%s1893_s22 + $0x370] sm:$0xff]  ;;  %v1511_v28 = vld [vmem:[#allocation2 + $0xc] ss:$16 sps:$4 sm:$0xff]   ;;  %808 = vmatprep.mubr.bf16.mxu0 %v1508_v20  ;;  %v240_v32 = vld [vmem:[%s1893_s22 + $0x140] sm:$0xff]  ;;  %v349_v39 = vpack.c.bf16 %v243_v25, %v241_v24 }
  0x63   : > { %793 = vmatpush2.bf16.msra.mxu0 %v358_v46  ;;  %v307_v31 = vld [vmem:[%s1893_s22 + $0x358] sm:$0xff]  ;;  %v242_v33 = vld [vmem:[%s1893_s22 + $0x150] sm:$0xff]  ;;  %1001 = vmatprep.mubr.bf16.mxu1 %v1511_v28  ;;  %v304_v35 = vld [vmem:[%s1893_s22 + $0x340] sm:$0xff]  ;;  %v382_v38 = vpack.c.bf16 %v310_v23, %v308_v22 }
  0x64   : > { %986 = vmatpush2.bf16.msra.mxu1 %v390_v47  ;;  %794 = vmatprep.subr.bf16.mxu0 %v357_v48  ;;  %v306_v36 = vld [vmem:[%s1893_s22 + $0x350] sm:$0xff]  ;;  %v237_v37 = vld [vmem:[%s1893_s22 + $0x128] sm:$0xff]  ;;  %v239_v40 = vld [vmem:[%s1893_s22 + $0x138] sm:$0xff]  ;;  %v381_v41 = vpack.c.bf16 %v307_v31, %v305_v30  ;;  %v348_v46 = vpack.c.bf16 %v242_v33, %v240_v32 }
  0x65   : > { %987 = vmatprep.subr.bf16.mxu1 %v389_v52  ;;  %v301_v42 = vld [vmem:[%s1893_s22 + $0x328] sm:$0xff]  ;;  %v303_v43 = vld [vmem:[%s1893_s22 + $0x338] sm:$0xff]  ;;  %v236_v44 = vld [vmem:[%s1893_s22 + $0x120] sm:$0xff]  ;;  %v380_v49 = vpack.c.bf16 %v306_v36, %v304_v35  ;;  %v347_v50 = vpack.c.bf16 %v239_v40, %v237_v37 }
  0x66   : > { %v238_v45 = vld [vmem:[%s1893_s22 + $0x130] sm:$0xff]  ;;  %v300_v47 = vld [vmem:[%s1893_s22 + $0x320] sm:$0xff]  ;;  %v233_v51 = vld [vmem:[%s1893_s22 + $0x108] sm:$0xff]  ;;  %v379_v52 = vpack.c.bf16 %v303_v43, %v301_v42 }
  0x67   : > { %795 = vmatpush2.bf16.msra.mxu0 %v356_v58  ;;  %v302_v48 = vld [vmem:[%s1893_s22 + $0x330] sm:$0xff]  ;;  %v235_v53 = vld [vmem:[%s1893_s22 + $0x118] sm:$0xff]  ;;  %v297_v54 = vld [vmem:[%s1893_s22 + $0x308] sm:$0xff]  ;;  %v346_v56 = vpack.c.bf16 %v238_v45, %v236_v44 }
  0x68   : > { %988 = vmatpush2.bf16.msra.mxu1 %v388_v59  ;;  %796 = vmatprep.subr.bf16.mxu0 %v355_v60  ;;  %v299_v55 = vld [vmem:[%s1893_s22 + $0x318] sm:$0xff]  ;;  %v232_v57 = vld [vmem:[%s1893_s22 + $0x100] sm:$0xff]  ;;  %v378_v58 = vpack.c.bf16 %v302_v48, %v300_v47  ;;  %v345_v59 = vpack.c.bf16 %v235_v53, %v233_v51  ;;  %v234_v60 = vld [vmem:[%s1893_s22 + $0x110] sm:$0xff] }
  0x69   : > { %989 = vmatprep.subr.bf16.mxu1 %v387_v0  ;;  %v377_v61 = vpack.c.bf16 %v299_v55, %v297_v54  ;;  %v296_v62 = vld [vmem:[%s1893_s22 + $0x300] sm:$0xff]  ;;  %v298_v63 = vld [vmem:[%s1893_s22 + $0x310] sm:$0xff]  ;;  %v344_v0 = vpack.c.bf16 %v234_v60, %v232_v57  ;;  %v1509_v3 = vld [vmem:[#allocation2 + $0x8] ss:$16 sps:$4 sm:$0xff]  }
  0x6a   : > { %v376_v1 = vpack.c.bf16 %v298_v63, %v296_v62  ;;  %v1506_v2 = vld [vmem:[#allocation2] ss:$16 sps:$4 sm:$0xff]   ;;  %v1512_v4 = vld [vmem:[#allocation2 + $0x24] ss:$16 sps:$4 sm:$0xff]   ;;  %v1514_v5 = vld [vmem:[#allocation2 + $0x2c] ss:$16 sps:$4 sm:$0xff]  }
  0x6b   : > { %797 = vmatpush2.bf16.msra.mxu0 %v354_v6  ;;  %v1516_v6 = vld [vmem:[#allocation2 + $0x20] ss:$16 sps:$4 sm:$0xff]   ;;  %v1517_v7 = vld [vmem:[#allocation2 + $0x28] ss:$16 sps:$4 sm:$0xff]   ;;  %v1518_v8 = vld [vmem:[#allocation2 + $0x44] ss:$16 sps:$4 sm:$0xff]  }
  0x6c   : > { %990 = vmatpush2.bf16.msra.mxu1 %v386_v10  ;;  %798 = vmatprep.subr.bf16.mxu0 %v353_v11  ;;  %v1520_v9 = vld [vmem:[#allocation2 + $0x4c] ss:$16 sps:$4 sm:$0xff]   ;;  %v1522_v10 = vld [vmem:[#allocation2 + $0x40] ss:$16 sps:$4 sm:$0xff]   ;;  %v1523_v11 = vld [vmem:[#allocation2 + $0x48] ss:$16 sps:$4 sm:$0xff]  }
  0x6d   : > { %991 = vmatprep.subr.bf16.mxu1 %v385_v15  ;;  %v1524_v12 = vld [vmem:[#allocation2 + $0x64] ss:$16 sps:$4 sm:$0xff]   ;;  %v1526_v13 = vld [vmem:[#allocation2 + $0x6c] ss:$16 sps:$4 sm:$0xff]   ;;  %v1528_v14 = vld [vmem:[#allocation2 + $0x60] ss:$16 sps:$4 sm:$0xff]  }
  0x6e   : > { %v1529_v15 = vld [vmem:[#allocation2 + $0x68] ss:$16 sps:$4 sm:$0xff]   ;;  %v1530_v16 = vld [vmem:[#allocation2 + $0x84] ss:$16 sps:$4 sm:$0xff]   ;;  %v1532_v17 = vld [vmem:[#allocation2 + $0x8c] ss:$16 sps:$4 sm:$0xff]  }
  0x6f   : > { %799 = vmatpush2.bf16.msra.mxu0 %v352_v21  ;;  %v1534_v18 = vld [vmem:[#allocation2 + $0x80] ss:$16 sps:$4 sm:$0xff]   ;;  %v1535_v19 = vld [vmem:[#allocation2 + $0x88] ss:$16 sps:$4 sm:$0xff]   ;;  %v1536_v20 = vld [vmem:[#allocation2 + $0xa4] ss:$16 sps:$4 sm:$0xff]  }
  0x70   : > { %992 = vmatpush2.bf16.msra.mxu1 %v384_v26  ;;  %800 = vmatprep.subr.bf16.mxu0 %v351_v27  ;;  %v1538_v21 = vld [vmem:[#allocation2 + $0xac] ss:$16 sps:$4 sm:$0xff]   ;;  %v1540_v22 = vld [vmem:[#allocation2 + $0xa0] ss:$16 sps:$4 sm:$0xff]   ;;  %v1541_v23 = vld [vmem:[#allocation2 + $0xa8] ss:$16 sps:$4 sm:$0xff]  }
  0x71   : > { %993 = vmatprep.subr.bf16.mxu1 %v383_v29  ;;  %v1542_v24 = vld [vmem:[#allocation2 + $0xc4] ss:$16 sps:$4 sm:$0xff]   ;;  %v1544_v25 = vld [vmem:[#allocation2 + $0xcc] ss:$16 sps:$4 sm:$0xff]   ;;  %v1546_v26 = vld [vmem:[#allocation2 + $0xc0] ss:$16 sps:$4 sm:$0xff]  }
  0x72   : > { %v1547_v27 = vld [vmem:[#allocation2 + $0xc8] ss:$16 sps:$4 sm:$0xff]   ;;  %v1548_v28 = vld [vmem:[#allocation2 + $0xe4] ss:$16 sps:$4 sm:$0xff]   ;;  %v1550_v29 = vld [vmem:[#allocation2 + $0xec] ss:$16 sps:$4 sm:$0xff]  }
  0x73   : > { %801 = vmatpush2.bf16.msra.mxu0 %v350_v34  ;;  %v1552_v30 = vld [vmem:[#allocation2 + $0xe0] ss:$16 sps:$4 sm:$0xff]   ;;  %v1553_v31 = vld [vmem:[#allocation2 + $0xe8] ss:$16 sps:$4 sm:$0xff]   ;;  %v1554_v32 = vld [vmem:[#allocation2 + $0x104] ss:$16 sps:$4 sm:$0xff]  }
  0x74   : > { %994 = vmatpush2.bf16.msra.mxu1 %v382_v38  ;;  %802 = vmatprep.subr.bf16.mxu0 %v349_v39  ;;  %v1556_v33 = vld [vmem:[#allocation2 + $0x10c] ss:$16 sps:$4 sm:$0xff]   ;;  %v1558_v34 = vld [vmem:[#allocation2 + $0x100] ss:$16 sps:$4 sm:$0xff]   ;;  %v1559_v35 = vld [vmem:[#allocation2 + $0x108] ss:$16 sps:$4 sm:$0xff]  }
  0x75   : > { %995 = vmatprep.subr.bf16.mxu1 %v381_v41  ;;  %v1560_v36 = vld [vmem:[#allocation2 + $0x124] ss:$16 sps:$4 sm:$0xff]   ;;  %v1562_v37 = vld [vmem:[#allocation2 + $0x12c] ss:$16 sps:$4 sm:$0xff]   ;;  %v1564_v38 = vld [vmem:[#allocation2 + $0x120] ss:$16 sps:$4 sm:$0xff]  }
  0x76   : > { %v1565_v39 = vld [vmem:[#allocation2 + $0x128] ss:$16 sps:$4 sm:$0xff]   ;;  %v1566_v40 = vld [vmem:[#allocation2 + $0x144] ss:$16 sps:$4 sm:$0xff]   ;;  %v1568_v41 = vld [vmem:[#allocation2 + $0x14c] ss:$16 sps:$4 sm:$0xff]  }
  0x77   : > { %803 = vmatpush2.bf16.msra.mxu0 %v348_v46  ;;  %v1570_v42 = vld [vmem:[#allocation2 + $0x140] ss:$16 sps:$4 sm:$0xff]   ;;  %v1571_v43 = vld [vmem:[#allocation2 + $0x148] ss:$16 sps:$4 sm:$0xff]   ;;  %v1572_v44 = vld [vmem:[#allocation2 + $0x164] ss:$16 sps:$4 sm:$0xff]  }
  0x78   : > { %996 = vmatpush2.bf16.msra.mxu1 %v380_v49  ;;  %804 = vmatprep.subr.bf16.mxu0 %v347_v50  ;;  %v1574_v45 = vld [vmem:[#allocation2 + $0x16c] ss:$16 sps:$4 sm:$0xff]   ;;  %v1576_v46 = vld [vmem:[#allocation2 + $0x160] ss:$16 sps:$4 sm:$0xff]   ;;  %v1577_v47 = vld [vmem:[#allocation2 + $0x168] ss:$16 sps:$4 sm:$0xff]  }
  0x79   : > { %997 = vmatprep.subr.bf16.mxu1 %v379_v52  ;;  %v1578_v48 = vld [vmem:[#allocation2 + $0x184] ss:$16 sps:$4 sm:$0xff]   ;;  %v1580_v49 = vld [vmem:[#allocation2 + $0x18c] ss:$16 sps:$4 sm:$0xff]   ;;  %v1582_v50 = vld [vmem:[#allocation2 + $0x180] ss:$16 sps:$4 sm:$0xff]  }
  0x7a   : > { %v1583_v51 = vld [vmem:[#allocation2 + $0x188] ss:$16 sps:$4 sm:$0xff]   ;;  %v1584_v52 = vld [vmem:[#allocation2 + $0x1a4] ss:$16 sps:$4 sm:$0xff]   ;;  %v1586_v53 = vld [vmem:[#allocation2 + $0x1ac] ss:$16 sps:$4 sm:$0xff]  }
  0x7b   : > { %805 = vmatpush2.bf16.msra.mxu0 %v346_v56  ;;  %v1588_v54 = vld [vmem:[#allocation2 + $0x1a0] ss:$16 sps:$4 sm:$0xff]   ;;  %v1589_v55 = vld [vmem:[#allocation2 + $0x1a8] ss:$16 sps:$4 sm:$0xff]   ;;  %v1590_v56 = vld [vmem:[#allocation2 + $0x1c4] ss:$16 sps:$4 sm:$0xff]  }
  0x7c   : > { %998 = vmatpush2.bf16.msra.mxu1 %v378_v58  ;;  %806 = vmatprep.subr.bf16.mxu0 %v345_v59  ;;  %v1592_v57 = vld [vmem:[#allocation2 + $0x1cc] ss:$16 sps:$4 sm:$0xff]   ;;  %v1594_v58 = vld [vmem:[#allocation2 + $0x1c0] ss:$16 sps:$4 sm:$0xff]   ;;  %v1595_v59 = vld [vmem:[#allocation2 + $0x1c8] ss:$16 sps:$4 sm:$0xff]  }
  0x7d   : > { %999 = vmatprep.subr.bf16.mxu1 %v377_v61  ;;  %v1596_v60 = vld [vmem:[#allocation2 + $0x1e4] ss:$16 sps:$4 sm:$0xff]   ;;  %v1598_v61 = vld [vmem:[#allocation2 + $0x1ec] ss:$16 sps:$4 sm:$0xff]   ;;  %v1600_v62 = vld [vmem:[#allocation2 + $0x1e0] ss:$16 sps:$4 sm:$0xff]  }
  0x7e   : > { %v1601_v63 = vld [vmem:[#allocation2 + $0x1e8] ss:$16 sps:$4 sm:$0xff]  }
  0x7f   : > { %807 = vmatpush2.bf16.msra.mxu0 %v344_v0 }
  0x80   : > { %1000 = vmatpush2.bf16.msra.mxu1 %v376_v1 }
  0x82   : > { %809 = vmatmul.mubr.bf16.vlgmr.msra.gmra.mxu0 %v1506_v2 }
  0x83   : > { %1002 = vmatmul.mubr.bf16.vlgmr.msra.gmra.mxu1 %v1509_v3  ;;  %818 = vmatprep.mubr.bf16.mxu0 %v1512_v4 }
  0x84   : > { %1011 = vmatprep.mubr.bf16.mxu1 %v1514_v5 }
  0x8a   : > { %819 = vmatmul.mubr.bf16.gmra.mxu0 %v1516_v6 }
  0x8b   : > { %1012 = vmatmul.mubr.bf16.gmra.mxu1 %v1517_v7  ;;  %828 = vmatprep.mubr.bf16.mxu0 %v1518_v8 }
  0x8c   : > { %1021 = vmatprep.mubr.bf16.mxu1 %v1520_v9 }
  0x92   : > { %829 = vmatmul.mubr.bf16.gmra.mxu0 %v1522_v10 }
  0x93   : > { %1022 = vmatmul.mubr.bf16.gmra.mxu1 %v1523_v11  ;;  %838 = vmatprep.mubr.bf16.mxu0 %v1524_v12 }
  0x94   : > { %1031 = vmatprep.mubr.bf16.mxu1 %v1526_v13 }
  0x9a   : > { %839 = vmatmul.mubr.bf16.gmra.mxu0 %v1528_v14 }
  0x9b   : > { %1032 = vmatmul.mubr.bf16.gmra.mxu1 %v1529_v15  ;;  %848 = vmatprep.mubr.bf16.mxu0 %v1530_v16 }
  0x9c   : > { %1041 = vmatprep.mubr.bf16.mxu1 %v1532_v17 }
  0xa2   : > { %849 = vmatmul.mubr.bf16.gmra.mxu0 %v1534_v18 }
  0xa3   : > { %1042 = vmatmul.mubr.bf16.gmra.mxu1 %v1535_v19  ;;  %858 = vmatprep.mubr.bf16.mxu0 %v1536_v20 }
  0xa4   : > { %1051 = vmatprep.mubr.bf16.mxu1 %v1538_v21 }
  0xaa   : > { %859 = vmatmul.mubr.bf16.gmra.mxu0 %v1540_v22 }
  0xab   : > { %1052 = vmatmul.mubr.bf16.gmra.mxu1 %v1541_v23  ;;  %868 = vmatprep.mubr.bf16.mxu0 %v1542_v24 }
  0xac   : > { %1061 = vmatprep.mubr.bf16.mxu1 %v1544_v25 }
  0xb2   : > { %869 = vmatmul.mubr.bf16.gmra.mxu0 %v1546_v26 }
  0xb3   : > { %1062 = vmatmul.mubr.bf16.gmra.mxu1 %v1547_v27  ;;  %878 = vmatprep.mubr.bf16.mxu0 %v1548_v28 }
  0xb4   : > { %1071 = vmatprep.mubr.bf16.mxu1 %v1550_v29 }
  0xba   : > { %879 = vmatmul.mubr.bf16.gmra.mxu0 %v1552_v30 }
  0xbb   : > { %1072 = vmatmul.mubr.bf16.gmra.mxu1 %v1553_v31  ;;  %888 = vmatprep.mubr.bf16.mxu0 %v1554_v32 }
  0xbc   : > { %1081 = vmatprep.mubr.bf16.mxu1 %v1556_v33 }
  0xc2   : > { %889 = vmatmul.mubr.bf16.gmra.mxu0 %v1558_v34 }
  0xc3   : > { %1082 = vmatmul.mubr.bf16.gmra.mxu1 %v1559_v35  ;;  %898 = vmatprep.mubr.bf16.mxu0 %v1560_v36 }
  0xc4   : > { %1091 = vmatprep.mubr.bf16.mxu1 %v1562_v37 }
  0xca   : > { %899 = vmatmul.mubr.bf16.gmra.mxu0 %v1564_v38 }
  0xcb   : > { %1092 = vmatmul.mubr.bf16.gmra.mxu1 %v1565_v39  ;;  %908 = vmatprep.mubr.bf16.mxu0 %v1566_v40 }
  0xcc   : > { %1101 = vmatprep.mubr.bf16.mxu1 %v1568_v41 }
  0xd2   : > { %909 = vmatmul.mubr.bf16.gmra.mxu0 %v1570_v42 }
  0xd3   : > { %1102 = vmatmul.mubr.bf16.gmra.mxu1 %v1571_v43  ;;  %918 = vmatprep.mubr.bf16.mxu0 %v1572_v44 }
  0xd4   : > { %1111 = vmatprep.mubr.bf16.mxu1 %v1574_v45 }
  0xda   : > { %919 = vmatmul.mubr.bf16.gmra.mxu0 %v1576_v46 }
  0xdb   : > { %1112 = vmatmul.mubr.bf16.gmra.mxu1 %v1577_v47  ;;  %928 = vmatprep.mubr.bf16.mxu0 %v1578_v48 }
  0xdc   : > { %1121 = vmatprep.mubr.bf16.mxu1 %v1580_v49 }
  0xe2   : > { %929 = vmatmul.mubr.bf16.gmra.mxu0 %v1582_v50 }
  0xe3   : > { %1122 = vmatmul.mubr.bf16.gmra.mxu1 %v1583_v51  ;;  %938 = vmatprep.mubr.bf16.mxu0 %v1584_v52 }
  0xe4   : > { %1131 = vmatprep.mubr.bf16.mxu1 %v1586_v53 }
  0xea   : > { %939 = vmatmul.mubr.bf16.gmra.mxu0 %v1588_v54 }
  0xeb   : > { %1132 = vmatmul.mubr.bf16.gmra.mxu1 %v1589_v55  ;;  %948 = vmatprep.mubr.bf16.mxu0 %v1590_v56 }
  0xec   : > { %1141 = vmatprep.mubr.bf16.mxu1 %v1592_v57 }
  0xf2   : > { %949 = vmatmul.mubr.bf16.gmra.mxu0 %v1594_v58 }
  0xf3   : > { %1142 = vmatmul.mubr.bf16.gmra.mxu1 %v1595_v59  ;;  %958 = vmatprep.mubr.bf16.mxu0 %v1596_v60 }
  0xf4   : > { %1151 = vmatprep.mubr.bf16.mxu1 %v1598_v61 }
  0xfa   : > { %959 = vmatmul.mubr.bf16.gmra.mxu0 %v1600_v62 }
  0xfb   : > { %1152 = vmatmul.mubr.bf16.gmra.mxu1 %v1601_v63 }
 0x142   : > { %v810_v0 = vpop.f32.mrf.mxu0 }
 0x143   : > { %v1003_v1 = vpop.f32.mrf.mxu1 }
 0x144   : > { %v1004_v2 = vadd.f32 %v1003_v1, %v810_v0  ;;  %v812_v3 = vpop.f32.mrf.mxu0 }
 0x145   : > { %v1005_v4 = vpop.f32.mrf.mxu1 }
 0x146   : > { %1162 = vst [vmem:[%s2028_s19] sm:$0xff] %v1004_v2  ;;  %v1006_v5 = vadd.f32 %v1005_v4, %v812_v3  ;;  %v814_v6 = vpop.f32.mrf.mxu0 }
 0x147   : > { %v1007_v7 = vpop.f32.mrf.mxu1 }
 0x148   : > { %1163 = vst [vmem:[%s2028_s19 + $0x8] sm:$0xff] %v1006_v5  ;;  %v1008_v8 = vadd.f32 %v1007_v7, %v814_v6  ;;  %v816_v9 = vpop.f32.mrf.mxu0 }
 0x149   : > { %v1009_v10 = vpop.f32.mrf.mxu1 }
 0x14a   : > { %1164 = vst [vmem:[%s2028_s19 + $0x10] sm:$0xff] %v1008_v8  ;;  %v1010_v11 = vadd.f32 %v1009_v10, %v816_v9  ;;  %v820_v12 = vpop.f32.mrf.mxu0 }
 0x14b   : > { %v1013_v13 = vpop.f32.mrf.mxu1 }
 0x14c   : > { %1165 = vst [vmem:[%s2028_s19 + $0x18] sm:$0xff] %v1010_v11  ;;  %v1014_v14 = vadd.f32 %v1013_v13, %v820_v12  ;;  %v822_v15 = vpop.f32.mrf.mxu0 }
 0x14d   : > { %v1015_v16 = vpop.f32.mrf.mxu1 }
 0x14e   : > { %1166 = vst [vmem:[%s2028_s19 + $0x20] sm:$0xff] %v1014_v14  ;;  %v1016_v17 = vadd.f32 %v1015_v16, %v822_v15  ;;  %v824_v18 = vpop.f32.mrf.mxu0 }
 0x14f   : > { %v1017_v19 = vpop.f32.mrf.mxu1 }
 0x150   : > { %1167 = vst [vmem:[%s2028_s19 + $0x28] sm:$0xff] %v1016_v17  ;;  %v1018_v20 = vadd.f32 %v1017_v19, %v824_v18  ;;  %v826_v21 = vpop.f32.mrf.mxu0 }
 0x151   : > { %v1019_v22 = vpop.f32.mrf.mxu1 }
 0x152   : > { %1168 = vst [vmem:[%s2028_s19 + $0x30] sm:$0xff] %v1018_v20  ;;  %v1020_v23 = vadd.f32 %v1019_v22, %v826_v21  ;;  %v830_v24 = vpop.f32.mrf.mxu0 }
 0x153   : > { %v1023_v25 = vpop.f32.mrf.mxu1 }
 0x154   : > { %1169 = vst [vmem:[%s2028_s19 + $0x38] sm:$0xff] %v1020_v23  ;;  %v1024_v26 = vadd.f32 %v1023_v25, %v830_v24  ;;  %v832_v27 = vpop.f32.mrf.mxu0 }
 0x155   : > { %v1025_v28 = vpop.f32.mrf.mxu1 }
 0x156   : > { %1170 = vst [vmem:[%s2028_s19 + $0x40] sm:$0xff] %v1024_v26  ;;  %v1026_v29 = vadd.f32 %v1025_v28, %v832_v27  ;;  %v834_v30 = vpop.f32.mrf.mxu0 }
 0x157   : > { %v1027_v31 = vpop.f32.mrf.mxu1 }
 0x158   : > { %1171 = vst [vmem:[%s2028_s19 + $0x48] sm:$0xff] %v1026_v29  ;;  %v1028_v32 = vadd.f32 %v1027_v31, %v834_v30  ;;  %v836_v33 = vpop.f32.mrf.mxu0 }
 0x159   : > { %v1029_v34 = vpop.f32.mrf.mxu1 }
 0x15a   : > { %1172 = vst [vmem:[%s2028_s19 + $0x50] sm:$0xff] %v1028_v32  ;;  %v1030_v35 = vadd.f32 %v1029_v34, %v836_v33  ;;  %v840_v36 = vpop.f32.mrf.mxu0 }
 0x15b   : > { %v1033_v37 = vpop.f32.mrf.mxu1 }
 0x15c   : > { %1173 = vst [vmem:[%s2028_s19 + $0x58] sm:$0xff] %v1030_v35  ;;  %v1034_v38 = vadd.f32 %v1033_v37, %v840_v36  ;;  %v842_v39 = vpop.f32.mrf.mxu0 }
 0x15d   : > { %v1035_v40 = vpop.f32.mrf.mxu1 }
 0x15e   : > { %1174 = vst [vmem:[%s2028_s19 + $0x60] sm:$0xff] %v1034_v38  ;;  %v1036_v41 = vadd.f32 %v1035_v40, %v842_v39  ;;  %v844_v42 = vpop.f32.mrf.mxu0 }
 0x15f   : > { %v1037_v43 = vpop.f32.mrf.mxu1 }
 0x160   : > { %1175 = vst [vmem:[%s2028_s19 + $0x68] sm:$0xff] %v1036_v41  ;;  %v1038_v44 = vadd.f32 %v1037_v43, %v844_v42  ;;  %v846_v45 = vpop.f32.mrf.mxu0 }
 0x161   : > { %v1039_v46 = vpop.f32.mrf.mxu1 }
 0x162   : > { %1176 = vst [vmem:[%s2028_s19 + $0x70] sm:$0xff] %v1038_v44  ;;  %v1040_v47 = vadd.f32 %v1039_v46, %v846_v45  ;;  %v850_v48 = vpop.f32.mrf.mxu0 }
 0x163   : > { %v1043_v49 = vpop.f32.mrf.mxu1 }
 0x164   : > { %1177 = vst [vmem:[%s2028_s19 + $0x78] sm:$0xff] %v1040_v47  ;;  %v1044_v50 = vadd.f32 %v1043_v49, %v850_v48  ;;  %v852_v51 = vpop.f32.mrf.mxu0 }
 0x165   : > { %v1045_v52 = vpop.f32.mrf.mxu1 }
 0x166   : > { %1178 = vst [vmem:[%s2028_s19 + $0x80] sm:$0xff] %v1044_v50  ;;  %v1046_v53 = vadd.f32 %v1045_v52, %v852_v51  ;;  %v854_v54 = vpop.f32.mrf.mxu0 }
 0x167   : > { %v1047_v55 = vpop.f32.mrf.mxu1 }
 0x168   : > { %1179 = vst [vmem:[%s2028_s19 + $0x88] sm:$0xff] %v1046_v53  ;;  %v1048_v56 = vadd.f32 %v1047_v55, %v854_v54  ;;  %v856_v57 = vpop.f32.mrf.mxu0 }
 0x169   : > { %v1049_v58 = vpop.f32.mrf.mxu1 }
 0x16a   : > { %1180 = vst [vmem:[%s2028_s19 + $0x90] sm:$0xff] %v1048_v56  ;;  %v1050_v59 = vadd.f32 %v1049_v58, %v856_v57  ;;  %v860_v60 = vpop.f32.mrf.mxu0 }
 0x16b   : > { %v1053_v61 = vpop.f32.mrf.mxu1 }
 0x16c   : > { %1181 = vst [vmem:[%s2028_s19 + $0x98] sm:$0xff] %v1050_v59  ;;  %v1054_v62 = vadd.f32 %v1053_v61, %v860_v60  ;;  %v862_v63 = vpop.f32.mrf.mxu0 }
 0x16d   : > { %v1055_v0 = vpop.f32.mrf.mxu1 }
 0x16e   : > { %1182 = vst [vmem:[%s2028_s19 + $0xa0] sm:$0xff] %v1054_v62  ;;  %v1056_v1 = vadd.f32 %v1055_v0, %v862_v63  ;;  %v864_v2 = vpop.f32.mrf.mxu0 }
 0x16f   : > { %v1057_v3 = vpop.f32.mrf.mxu1 }
 0x170   : > { %1183 = vst [vmem:[%s2028_s19 + $0xa8] sm:$0xff] %v1056_v1  ;;  %v1058_v4 = vadd.f32 %v1057_v3, %v864_v2  ;;  %v866_v5 = vpop.f32.mrf.mxu0 }
 0x171   : > { %v1059_v6 = vpop.f32.mrf.mxu1 }
 0x172   : > { %1184 = vst [vmem:[%s2028_s19 + $0xb0] sm:$0xff] %v1058_v4  ;;  %v1060_v7 = vadd.f32 %v1059_v6, %v866_v5  ;;  %v870_v8 = vpop.f32.mrf.mxu0 }
 0x173   : > { %v1063_v9 = vpop.f32.mrf.mxu1 }
 0x174   : > { %1185 = vst [vmem:[%s2028_s19 + $0xb8] sm:$0xff] %v1060_v7  ;;  %v1064_v10 = vadd.f32 %v1063_v9, %v870_v8  ;;  %v872_v11 = vpop.f32.mrf.mxu0 }
 0x175   : > { %v1065_v12 = vpop.f32.mrf.mxu1 }
 0x176   : > { %1186 = vst [vmem:[%s2028_s19 + $0xc0] sm:$0xff] %v1064_v10  ;;  %v1066_v13 = vadd.f32 %v1065_v12, %v872_v11  ;;  %v874_v14 = vpop.f32.mrf.mxu0 }
 0x177   : > { %v1067_v15 = vpop.f32.mrf.mxu1 }
 0x178   : > { %1187 = vst [vmem:[%s2028_s19 + $0xc8] sm:$0xff] %v1066_v13  ;;  %v1068_v16 = vadd.f32 %v1067_v15, %v874_v14  ;;  %v876_v17 = vpop.f32.mrf.mxu0 }
 0x179   : > { %v1069_v18 = vpop.f32.mrf.mxu1 }
 0x17a   : > { %1188 = vst [vmem:[%s2028_s19 + $0xd0] sm:$0xff] %v1068_v16  ;;  %v1070_v19 = vadd.f32 %v1069_v18, %v876_v17  ;;  %v880_v20 = vpop.f32.mrf.mxu0 }
 0x17b   : > { %v1073_v21 = vpop.f32.mrf.mxu1 }
 0x17c   : > { %1189 = vst [vmem:[%s2028_s19 + $0xd8] sm:$0xff] %v1070_v19  ;;  %v1074_v22 = vadd.f32 %v1073_v21, %v880_v20  ;;  %v882_v23 = vpop.f32.mrf.mxu0 }
 0x17d   : > { %v1075_v24 = vpop.f32.mrf.mxu1 }
 0x17e   : > { %1190 = vst [vmem:[%s2028_s19 + $0xe0] sm:$0xff] %v1074_v22  ;;  %v1076_v25 = vadd.f32 %v1075_v24, %v882_v23  ;;  %v884_v26 = vpop.f32.mrf.mxu0 }
 0x17f   : > { %v1077_v27 = vpop.f32.mrf.mxu1 }
 0x180   : > { %1191 = vst [vmem:[%s2028_s19 + $0xe8] sm:$0xff] %v1076_v25  ;;  %v1078_v28 = vadd.f32 %v1077_v27, %v884_v26  ;;  %v886_v29 = vpop.f32.mrf.mxu0 }
 0x181   : > { %v1079_v30 = vpop.f32.mrf.mxu1 }
 0x182   : > { %1192 = vst [vmem:[%s2028_s19 + $0xf0] sm:$0xff] %v1078_v28  ;;  %v1080_v31 = vadd.f32 %v1079_v30, %v886_v29  ;;  %v890_v32 = vpop.f32.mrf.mxu0 }
 0x183   : > { %v1083_v33 = vpop.f32.mrf.mxu1 }
 0x184   : > { %1193 = vst [vmem:[%s2028_s19 + $0xf8] sm:$0xff] %v1080_v31  ;;  %v1084_v34 = vadd.f32 %v1083_v33, %v890_v32  ;;  %v892_v35 = vpop.f32.mrf.mxu0 }
 0x185   : > { %v1085_v36 = vpop.f32.mrf.mxu1 }
 0x186   : > { %1194 = vst [vmem:[%s2028_s19 + $0x100] sm:$0xff] %v1084_v34  ;;  %v1086_v37 = vadd.f32 %v1085_v36, %v892_v35  ;;  %v894_v38 = vpop.f32.mrf.mxu0 }
 0x187   : > { %v1087_v39 = vpop.f32.mrf.mxu1 }
 0x188   : > { %1195 = vst [vmem:[%s2028_s19 + $0x108] sm:$0xff] %v1086_v37  ;;  %v1088_v40 = vadd.f32 %v1087_v39, %v894_v38  ;;  %v896_v41 = vpop.f32.mrf.mxu0 }
 0x189   : > { %v1089_v42 = vpop.f32.mrf.mxu1 }
 0x18a   : > { %1196 = vst [vmem:[%s2028_s19 + $0x110] sm:$0xff] %v1088_v40  ;;  %v1090_v43 = vadd.f32 %v1089_v42, %v896_v41  ;;  %v900_v44 = vpop.f32.mrf.mxu0 }
 0x18b   : > { %v1093_v45 = vpop.f32.mrf.mxu1 }
 0x18c   : > { %1197 = vst [vmem:[%s2028_s19 + $0x118] sm:$0xff] %v1090_v43  ;;  %v1094_v46 = vadd.f32 %v1093_v45, %v900_v44  ;;  %v902_v47 = vpop.f32.mrf.mxu0 }
 0x18d   : > { %v1095_v48 = vpop.f32.mrf.mxu1 }
 0x18e   : > { %1198 = vst [vmem:[%s2028_s19 + $0x120] sm:$0xff] %v1094_v46  ;;  %v1096_v49 = vadd.f32 %v1095_v48, %v902_v47  ;;  %v904_v50 = vpop.f32.mrf.mxu0 }
 0x18f   : > { %v1097_v51 = vpop.f32.mrf.mxu1 }
 0x190   : > { %1199 = vst [vmem:[%s2028_s19 + $0x128] sm:$0xff] %v1096_v49  ;;  %v1098_v52 = vadd.f32 %v1097_v51, %v904_v50  ;;  %v906_v53 = vpop.f32.mrf.mxu0 }
 0x191   : > { %v1099_v54 = vpop.f32.mrf.mxu1 }
 0x192   : > { %1200 = vst [vmem:[%s2028_s19 + $0x130] sm:$0xff] %v1098_v52  ;;  %v1100_v55 = vadd.f32 %v1099_v54, %v906_v53  ;;  %v910_v56 = vpop.f32.mrf.mxu0 }
 0x193   : > { %v1103_v57 = vpop.f32.mrf.mxu1 }
 0x194   : > { %1201 = vst [vmem:[%s2028_s19 + $0x138] sm:$0xff] %v1100_v55  ;;  %v1104_v58 = vadd.f32 %v1103_v57, %v910_v56  ;;  %v912_v59 = vpop.f32.mrf.mxu0 }
 0x195   : > { %v1105_v60 = vpop.f32.mrf.mxu1 }
 0x196   : > { %1202 = vst [vmem:[%s2028_s19 + $0x140] sm:$0xff] %v1104_v58  ;;  %v1106_v61 = vadd.f32 %v1105_v60, %v912_v59  ;;  %v914_v62 = vpop.f32.mrf.mxu0 }
 0x197   : > { %v1107_v63 = vpop.f32.mrf.mxu1 }
 0x198   : > { %1203 = vst [vmem:[%s2028_s19 + $0x148] sm:$0xff] %v1106_v61  ;;  %v1108_v0 = vadd.f32 %v1107_v63, %v914_v62  ;;  %v916_v1 = vpop.f32.mrf.mxu0 }
 0x199   : > { %v1109_v2 = vpop.f32.mrf.mxu1 }
 0x19a   : > { %1204 = vst [vmem:[%s2028_s19 + $0x150] sm:$0xff] %v1108_v0  ;;  %v1110_v3 = vadd.f32 %v1109_v2, %v916_v1  ;;  %v920_v4 = vpop.f32.mrf.mxu0 }
 0x19b   : > { %v1113_v5 = vpop.f32.mrf.mxu1 }
 0x19c   : > { %1205 = vst [vmem:[%s2028_s19 + $0x158] sm:$0xff] %v1110_v3  ;;  %v1114_v6 = vadd.f32 %v1113_v5, %v920_v4  ;;  %v922_v7 = vpop.f32.mrf.mxu0 }
 0x19d   : > { %v1115_v8 = vpop.f32.mrf.mxu1 }
 0x19e   : > { %1206 = vst [vmem:[%s2028_s19 + $0x160] sm:$0xff] %v1114_v6  ;;  %v1116_v9 = vadd.f32 %v1115_v8, %v922_v7  ;;  %v924_v10 = vpop.f32.mrf.mxu0 }
 0x19f   : > { %v1117_v11 = vpop.f32.mrf.mxu1 }
 0x1a0   : > { %1207 = vst [vmem:[%s2028_s19 + $0x168] sm:$0xff] %v1116_v9  ;;  %v1118_v12 = vadd.f32 %v1117_v11, %v924_v10  ;;  %v926_v13 = vpop.f32.mrf.mxu0 }
 0x1a1   : > { %v1119_v14 = vpop.f32.mrf.mxu1 }
 0x1a2   : > { %1208 = vst [vmem:[%s2028_s19 + $0x170] sm:$0xff] %v1118_v12  ;;  %v1120_v15 = vadd.f32 %v1119_v14, %v926_v13  ;;  %v930_v16 = vpop.f32.mrf.mxu0 }
 0x1a3   : > { %v1123_v17 = vpop.f32.mrf.mxu1 }
 0x1a4   : > { %1209 = vst [vmem:[%s2028_s19 + $0x178] sm:$0xff] %v1120_v15  ;;  %v1124_v18 = vadd.f32 %v1123_v17, %v930_v16  ;;  %v932_v19 = vpop.f32.mrf.mxu0 }
 0x1a5   : > { %v1125_v20 = vpop.f32.mrf.mxu1 }
 0x1a6   : > { %1210 = vst [vmem:[%s2028_s19 + $0x180] sm:$0xff] %v1124_v18  ;;  %v1126_v21 = vadd.f32 %v1125_v20, %v932_v19  ;;  %v934_v22 = vpop.f32.mrf.mxu0 }
 0x1a7   : > { %v1127_v23 = vpop.f32.mrf.mxu1 }
 0x1a8   : > { %1211 = vst [vmem:[%s2028_s19 + $0x188] sm:$0xff] %v1126_v21  ;;  %v1128_v24 = vadd.f32 %v1127_v23, %v934_v22  ;;  %v936_v25 = vpop.f32.mrf.mxu0 }
 0x1a9   : > { %v1129_v26 = vpop.f32.mrf.mxu1 }
 0x1aa   : > { %1212 = vst [vmem:[%s2028_s19 + $0x190] sm:$0xff] %v1128_v24  ;;  %v1130_v27 = vadd.f32 %v1129_v26, %v936_v25  ;;  %v940_v28 = vpop.f32.mrf.mxu0 }
 0x1ab   : > { %v1133_v29 = vpop.f32.mrf.mxu1 }
 0x1ac   : > { %1213 = vst [vmem:[%s2028_s19 + $0x198] sm:$0xff] %v1130_v27  ;;  %v1134_v30 = vadd.f32 %v1133_v29, %v940_v28  ;;  %v942_v31 = vpop.f32.mrf.mxu0 }
 0x1ad   : > { %v1135_v32 = vpop.f32.mrf.mxu1 }
 0x1ae   : > { %1214 = vst [vmem:[%s2028_s19 + $0x1a0] sm:$0xff] %v1134_v30  ;;  %v1136_v33 = vadd.f32 %v1135_v32, %v942_v31  ;;  %v944_v34 = vpop.f32.mrf.mxu0 }
 0x1af   : > { %v1137_v35 = vpop.f32.mrf.mxu1 }
 0x1b0   : > { %1215 = vst [vmem:[%s2028_s19 + $0x1a8] sm:$0xff] %v1136_v33  ;;  %v1138_v36 = vadd.f32 %v1137_v35, %v944_v34  ;;  %v946_v37 = vpop.f32.mrf.mxu0 }
 0x1b1   : > { %v1139_v38 = vpop.f32.mrf.mxu1 }
 0x1b2   : > { %1216 = vst [vmem:[%s2028_s19 + $0x1b0] sm:$0xff] %v1138_v36  ;;  %v1140_v39 = vadd.f32 %v1139_v38, %v946_v37  ;;  %v950_v40 = vpop.f32.mrf.mxu0 }
 0x1b3   : > { %v1143_v41 = vpop.f32.mrf.mxu1 }
 0x1b4   : > { %1217 = vst [vmem:[%s2028_s19 + $0x1b8] sm:$0xff] %v1140_v39  ;;  %v1144_v42 = vadd.f32 %v1143_v41, %v950_v40  ;;  %v952_v43 = vpop.f32.mrf.mxu0 }
 0x1b5   : > { %v1145_v44 = vpop.f32.mrf.mxu1 }
 0x1b6   : > { %1218 = vst [vmem:[%s2028_s19 + $0x1c0] sm:$0xff] %v1144_v42  ;;  %v1146_v45 = vadd.f32 %v1145_v44, %v952_v43  ;;  %v954_v46 = vpop.f32.mrf.mxu0 }
 0x1b7   : > { %v1147_v47 = vpop.f32.mrf.mxu1 }
 0x1b8   : > { %1219 = vst [vmem:[%s2028_s19 + $0x1c8] sm:$0xff] %v1146_v45  ;;  %v1148_v48 = vadd.f32 %v1147_v47, %v954_v46  ;;  %v956_v49 = vpop.f32.mrf.mxu0 }
 0x1b9   : > { %v1149_v50 = vpop.f32.mrf.mxu1 }
 0x1ba   : > { %1220 = vst [vmem:[%s2028_s19 + $0x1d0] sm:$0xff] %v1148_v48  ;;  %v1150_v51 = vadd.f32 %v1149_v50, %v956_v49  ;;  %v960_v52 = vpop.f32.mrf.mxu0 }
 0x1bb   : > { %v1153_v53 = vpop.f32.mrf.mxu1 }
 0x1bc   : > { %1221 = vst [vmem:[%s2028_s19 + $0x1d8] sm:$0xff] %v1150_v51  ;;  %v1154_v54 = vadd.f32 %v1153_v53, %v960_v52  ;;  %v962_v55 = vpop.f32.mrf.mxu0 }
 0x1bd   : > { %v1155_v56 = vpop.f32.mrf.mxu1 }
 0x1be   : > { %1222 = vst [vmem:[%s2028_s19 + $0x1e0] sm:$0xff] %v1154_v54  ;;  %v1156_v57 = vadd.f32 %v1155_v56, %v962_v55  ;;  %v964_v58 = vpop.f32.mrf.mxu0 }
 0x1bf   : > { %v1157_v59 = vpop.f32.mrf.mxu1 }
 0x1c0   : > { %1223 = vst [vmem:[%s2028_s19 + $0x1e8] sm:$0xff] %v1156_v57  ;;  %v1158_v60 = vadd.f32 %v1157_v59, %v964_v58  ;;  %v966_v61 = vpop.f32.mrf.mxu0 }
 0x1c1   : > { %v1159_v62 = vpop.f32.mrf.mxu1 }
 0x1c2   : > { %1224 = vst [vmem:[%s2028_s19 + $0x1f0] sm:$0xff] %v1158_v60  ;;  %v1160_v63 = vadd.f32 %v1159_v62, %v966_v61 }
 0x1c4   : > { %1225 = vst [vmem:[%s2028_s19 + $0x1f8] sm:$0xff] %v1160_v63 }
 0x1c5   : > { %1669 = shalt.err (!%p1666_p5)
}
 0x1c6   : > { %s1670_s3 = scalar_lea.hbm %s2097_s26, 8192  ;;  %s1674_s7 = scalar_lea.hbm %s2151_s2, 16384 }
 0x1c7   : > { %p1671_p7 = scmp.ne.s32.totalorder %s2097_s26, %s1670_s3  ;;  %p1675_p9 = scmp.lt.s32.totalorder %s2097_s26, %s2151_s2 }
 0x1c8   : > { %p1676_p11 = scmp.lt.s32.totalorder %s1674_s7, %s1670_s3 }
 0x1c9   : > { %p1672_p4 = pnand %p1671_p7, %p1854_p13 }
 0x1ca   : > { %p1677_p10 = por %p1676_p11, %p1675_p9 }
 0x1cb   : > { %p1673_p6 = pneg %p1672_p4 }
 0x1cd   : > { %p1678_p1 = pnand %p1677_p10, %p1673_p6 }
 0x1cf   : > { %1681 = shalt.err (!%p1678_p1)
}
 0x1d0   : > { %s1747_s17 = smov 256   ;;  %s1748_s19 = smov 16  }
 0x1d1   : > { %1435 = dma.vmem_to_hbm [thread:$0]  (%p1854_p13), %s2099_s28, 8192, %s2097_s26, %s1227_s12, %s1747_s17, %s1747_s17, %s1748_s19  }
 0x1d2 PF: > { %s1258_s21 = sand.u32 1, %s1720_s9   ;;  %p2165_p8 = scmp.ne.s32.totalorder %s2157_s20, 0 }
 0x1d3   : > { %p2166_p12 = scmp.ge.s32.totalorder %s1740_s14, 2  ;;  %s1259_s23 = scalar_lea.sflag [#allocation4], %s1258_s21 }
 0x1d5   : > { %p1446_p0 = pnand %p2166_p12, %p2165_p8 }
 0x1d7   : > { %p1447_p2 = pneg %p1446_p0 }
 0x1d9   : > { %1715 = dma.done.wait (%p1447_p2), %s1259_s23, 8192  }
 0x1da   : > { %1717 = vsyncadd (%p1447_p2), %s1259_s23, 4294959104  ;;  %s19_s14 = sadd.s32 1, %s1740_s14   ;;  %s2167_s9 = smov %s1724_s10 }
 0x1db   : > { %p16_p3 = scmp.ge.s32.totalorder %s19_s14, 4   ;;  %s2168_s10 = smov %s1728_s11 }
 0x1dc   : > { %s2169_s11 = smov %s1863_s15  ;;  %s2170_s12 = smov %s1736_s13 }
 0x1dd   : > { %s2171_s13 = smov %s2173_s25  ;;  %18 = sbr.rel (!%p16_p3) target bundleno = 7 (0x7), region = 78 }
 0x1e2   :  { %1264 = vsyncpa [#allocation3], 1 }
 0x1e3   :  { %1266 = vsyncpa [#allocation3 + $0x1], 1 }
 0x1e4   :  { %1267 = vsyncpa [#allocation6], 1 }
 0x1e5   :  { %1269 = vsyncpa [#allocation6 + $0x1], 1 }
 0x1e6   :  { %1270 = vsyncpa [#allocation4], 1 }
 0x1e7   :  { %1272 = vsyncpa [#allocation4 + $0x1], 1 }

</bundles_post_ra>
